<compile_context>
chip_gen: v5e
topology: v5e:2x2
jax: 0.10.0
libtpu: 0.0.40
codegen_flags: <defaults>
</compile_context>

<pallas_src>
import jax
import jax.numpy as jnp
from jax.experimental import pallas as pl
from jax.experimental.pallas import tpu as pltpu

HIDDEN = 1024  # matches nn.Linear(1024, 1024) in the module


# ---------------------------------------------------------------------------
# Kernel
# ---------------------------------------------------------------------------
def _all_reduce_kernel(x_ref, o_ref):
    """x_ref: (TP, tm, H) — all TP shards of one row tile.

    Unrolled per-shard f32 accumulation (tp is small & static) so the live
    working set is one (tm, H) f32 accumulator + one shard slice instead of a
    full (TP, tm, H) f32 temporary.
    """
    tp = x_ref.shape[0]
    acc = x_ref[0].astype(jnp.float32)
    for t in range(1, tp):          # static Python loop: fully unrolled VPU adds
        acc = acc + x_ref[t].astype(jnp.float32)
    o_ref[...] = acc.astype(o_ref.dtype)


# ---------------------------------------------------------------------------
# Tiling helpers
# ---------------------------------------------------------------------------
def _sublane_multiple(dtype) -> int:
    """Rows per fully-packed sublane group for this dtype."""
    itemsize = jnp.dtype(dtype).itemsize
    return {4: 8, 2: 16, 1: 32}.get(itemsize, 8)


def _vmem_budget_bytes() -> int:
    """~45% of physical VMEM: ~28 MiB on v7x (64 MiB), ~57 MiB on v5e/v6e."""
    try:
        info = pltpu.get_tpu_info()
        cap = getattr(info, "vmem_capacity_bytes", None)
        if cap:
            return int(cap * 0.45)
    except Exception:
        pass
    return 24 << 20  # safe fallback (fits v7x)


def _largest_divisor_tile(n: int, tm: int, sub: int) -> int:
    """Largest multiple of `sub` that divides n and is <= tm (0 if none)."""
    cand = (tm // sub) * sub
    while cand >= sub:
        if n % cand == 0:
            return cand
        cand -= sub
    return 0


def _pick_row_tile(tp: int, n: int, h: int, dtype, *, tm_cap: int = 2048) -> int:
    """Row tile sizing:
      * fits (double-buffered input block + output block + f32 accumulator)
        inside the generation-aware VMEM budget,
      * keeps >= 4 grid steps when n allows (v7x two-TC sharding),
      * rounds to the dtype-packed sublane multiple,
      * prefers a divisor of n (no ragged tail / masked stores),
      * falls back to tm = n (full dim) for small n — always legal.
    """
    itemsize = jnp.dtype(dtype).itemsize
    sub = _sublane_multiple(dtype)
    budget = _vmem_budget_bytes()

    # Live bytes per output row: 2x input block rows (tp shards each),
    # 2x output rows, 1x f32 accumulator row.
    per_row = 2 * tp * h * itemsize + 2 * h * itemsize + h * 4
    tm = max(budget // per_row, 1)
    tm = min(tm, tm_cap)

    # Keep at least ~4 grid steps when n allows, so the 'parallel' grid axis
    # can shard across both v7x TensorCores.
    if n >= 4 * sub:
        target = -(-pl.cdiv(n, 4) // sub) * sub  # round cdiv(n,4) up to sub
        tm = min(tm, target)

    if tm >= n:
        return int(n)  # full-dim block: always legal, even if n < sublane mult

    div = _largest_divisor_tile(n, tm, sub)
    if div > 0:
        return int(div)

    tm = max(sub, (tm // sub) * sub)
    return int(min(tm, n))


# ---------------------------------------------------------------------------
# Pallas wrapper
# ---------------------------------------------------------------------------
def tp_all_reduce(shards: jax.Array) -> jax.Array:
    """shards: (TP, N, H) stacked per-rank hidden_states (N = B*S rows).

    Returns the all-reduced (summed-over-TP) tensor of shape (N, H), i.e.
    what every rank in the group holds after dist.all_reduce(SUM).
    Pass bf16 shards to halve HBM traffic; accumulation is f32 either way.
    """
    tp, n, h = shards.shape
    assert h % 128 == 0, "hidden dim must be lane-aligned (multiple of 128)"

    itemsize = jnp.dtype(shards.dtype).itemsize
    tm = _pick_row_tile(tp, n, h, shards.dtype)
    grid = (pl.cdiv(n, tm),)  # single fully-parallel row axis

    # Scoped-VMEM limit: double-buffered input + output blocks, the f32
    # accumulator, plus 4 MiB slack for Mosaic internal scratch.
    block_bytes = (2 * tp * tm * h * itemsize        # double-buffered input
                   + 2 * tm * h * itemsize           # double-buffered output
                   + tm * h * 4)                     # f32 accumulator
    vmem_limit = max(block_bytes + (4 << 20), 16 << 20)

    cost = pl.CostEstimate(
        flops=max(tp - 1, 0) * n * h,                # (tp-1) adds per element
        transcendentals=0,
        bytes_accessed=(tp + 1) * n * h * itemsize,  # read tp shards, write 1
    )

    return pl.pallas_call(
        _all_reduce_kernel,
        out_shape=jax.ShapeDtypeStruct((n, h), shards.dtype),
        grid_spec=pltpu.PrefetchScalarGridSpec(
            num_scalar_prefetch=0,
            grid=grid,
            in_specs=[
                # Whole TP stack of this row tile in one block.
                pl.BlockSpec((tp, tm, h), lambda i: (0, i, 0)),
            ],
            out_specs=pl.BlockSpec((tm, h), lambda i: (i, 0)),
        ),
        compiler_params=pltpu.CompilerParams(
            dimension_semantics=("parallel",),
            vmem_limit_bytes=int(vmem_limit),
        ),
        cost_estimate=cost,
    )(shards)


# ---------------------------------------------------------------------------
# Module port
# ---------------------------------------------------------------------------
class AllReduceBlockPallas:
    """JAX/Pallas port of AllReduceBlock (forward only)."""

    def __init__(self, tp_size: int, key: jax.Array):
        self.tp_size = tp_size
        # nn.Linear(1024, 1024) parameters — deterministically initialized,
        # unused in forward (exactly like the PyTorch module).
        kw, kb = jax.random.split(key)
        bound = 1.0 / (HIDDEN ** 0.5)
        self.linear_w = jax.random.uniform(
            kw, (HIDDEN, HIDDEN), jnp.float32, -bound, bound)
        self.linear_b = jax.random.uniform(
            kb, (HIDDEN,), jnp.float32, -bound, bound)

    def forward(self, hidden_states_per_rank: jax.Array) -> jax.Array:
        """hidden_states_per_rank: (TP, B, S, H). Returns (B, S, H): the
        all-reduced hidden_states every rank holds after forward."""
        tp, b, s, h = hidden_states_per_rank.shape
        assert tp == self.tp_size and h == HIDDEN
        # copy_to_tensor_model_parallel_region: identity in forward.
        shards = hidden_states_per_rank.reshape(tp, b * s, h)
        # reduce_from_tensor_model_parallel_region: all_reduce SUM (Pallas).
        # (No dtype cast here: pass bf16 shards from the producer to halve
        #  HBM traffic; the kernel accumulates in f32 regardless.)
        reduced = tp_all_reduce(shards)
        return reduced.reshape(b, s, h)


if __name__ == "__main__":
    key = jax.random.PRNGKey(0)
    k_param, k_x = jax.random.split(key)

    TP, B, S, H = 4, 2, 8, HIDDEN  # small shapes; H fixed by the module
    block = AllReduceBlockPallas(tp_size=TP, key=k_param)

    # Per-rank hidden_states stacked along the TP axis.
    x = jax.random.normal(k_x, (TP, B, S, H), dtype=jnp.float32)

    out = block.forward(x)
    out = jax.block_until_ready(out)

    # Reference: element-wise SUM across the TP group (dist.all_reduce).
    ref = jnp.sum(x, axis=0)
    assert out.shape == (B, S, H)
    assert jnp.allclose(out, ref, atol=1e-5, rtol=1e-5)

    # Quick bf16 path check (f32 accumulation inside the kernel).
    xb = x.astype(jnp.bfloat16)
    out_b = jax.block_until_ready(block.forward(xb))
    ref_b = jnp.sum(xb.astype(jnp.float32), axis=0).astype(jnp.bfloat16)
    assert jnp.allclose(out_b.astype(jnp.float32), ref_b.astype(jnp.float32),
                        atol=3e-2, rtol=3e-2)

    print("KERNEL_OK")
</pallas_src>

<mosaic_0001>
module attributes {stable_mosaic.version = 11 : i64} {
  func.func @_all_reduce_kernel(%arg0: i32, %arg1: memref<4x16x1024xf32, #tpu.memory_space<vmem>>, %arg2: memref<16x1024xf32, #tpu.memory_space<vmem>>) attributes {dimension_semantics = [#tpu.dimension_semantics<parallel>], iteration_bounds = array<i64: 1>, scalar_prefetch = 0 : i64, scratch_operands = 0 : i64, tpu.core_type = #tpu.core_type<tc>, window_params = [{transform_indices = @transform_0, window_bounds = array<i64: 4, 16, 1024>}, {transform_indices = @transform_1, window_bounds = array<i64: 16, 1024>}]} {
    %c0 = arith.constant 0 : index
    %c0_0 = arith.constant 0 : index
    %c0_1 = arith.constant 0 : index
    %0 = vector.load %arg1[%c0, %c0_0, %c0_1] : memref<4x16x1024xf32, #tpu.memory_space<vmem>>, vector<1x16x1024xf32>
    %1 = vector.shape_cast %0 : vector<1x16x1024xf32> to vector<16x1024xf32>
    %c1 = arith.constant 1 : index
    %c0_2 = arith.constant 0 : index
    %c0_3 = arith.constant 0 : index
    %2 = vector.load %arg1[%c1, %c0_2, %c0_3] : memref<4x16x1024xf32, #tpu.memory_space<vmem>>, vector<1x16x1024xf32>
    %3 = vector.shape_cast %2 : vector<1x16x1024xf32> to vector<16x1024xf32>
    %4 = arith.addf %1, %3 : vector<16x1024xf32>
    %c2 = arith.constant 2 : index
    %c0_4 = arith.constant 0 : index
    %c0_5 = arith.constant 0 : index
    %5 = vector.load %arg1[%c2, %c0_4, %c0_5] : memref<4x16x1024xf32, #tpu.memory_space<vmem>>, vector<1x16x1024xf32>
    %6 = vector.shape_cast %5 : vector<1x16x1024xf32> to vector<16x1024xf32>
    %7 = arith.addf %4, %6 : vector<16x1024xf32>
    %c3 = arith.constant 3 : index
    %c0_6 = arith.constant 0 : index
    %c0_7 = arith.constant 0 : index
    %8 = vector.load %arg1[%c3, %c0_6, %c0_7] : memref<4x16x1024xf32, #tpu.memory_space<vmem>>, vector<1x16x1024xf32>
    %9 = vector.shape_cast %8 : vector<1x16x1024xf32> to vector<16x1024xf32>
    %10 = arith.addf %7, %9 : vector<16x1024xf32>
    %c0_8 = arith.constant 0 : index
    %c0_9 = arith.constant 0 : index
    %11 = vector.load %arg2[%c0_8, %c0_9] : memref<16x1024xf32, #tpu.memory_space<vmem>>, vector<16x1024xf32>
    tpu.vector_store %arg2[%c0_8, %c0_9], %10 {strides = array<i32>} : memref<16x1024xf32, #tpu.memory_space<vmem>>, vector<16x1024xf32>,
    return
  }
  func.func @transform_0(%arg0: i32) -> (i32, i32, i32) {
    %c0_i32 = arith.constant 0 : i32
    %c0_i32_0 = arith.constant 0 : i32
    %c0_i32_1 = arith.constant 0 : i32
    return %c0_i32, %arg0, %c0_i32_0 : i32, i32, i32
  }
  func.func @transform_1(%arg0: i32) -> (i32, i32) {
    %c0_i32 = arith.constant 0 : i32
    %c0_i32_0 = arith.constant 0 : i32
    return %arg0, %c0_i32 : i32, i32
  }
}

</mosaic_0001>

<bundles_post_ra>
// kernel: tpu_custom_call.1
= control target key start
LH: loop header
LB: loop body
LE: loop exit
PB: predicated region body
PF: predicated region fallthrough
CT: control target
= control target key end

     0   :  { %6 = vsyncpa [#allocation3], 0  ;;  %s257_s0 = inlined_call_operand.hbm [shape: f32[4,16,1024], index: 0, kind: input, shape index: {}]   ;;  %s258_s1 = inlined_call_operand.hbm [shape: f32[16,1024], index: 1, kind: output, shape index: {}]  }
   0x1   :  { %7 = vsyncpa [#allocation4], 0  ;;  %s12_s8 = sshll.u32 %s257_s0, 4  ;;  %s231_s9 = smov [#allocation2]   ;;  %s13_s8 = int_to_ptr.hbm [resolvable:$true] %s12_s8 }
   0x2   :  { %s14_s10 = sshll.u32 %s231_s9, 4  ;;  %s232_s11 = smov 1024   ;;  %s15_s10 = int_to_ptr.vmem [resolvable:$true] %s14_s10 }
   0x3   :  { %s233_s12 = smov 64  }
   0x4   :  { %20 = dma.hbm_to_vmem [thread:$0]  %s13_s8, 8192, %s15_s10, [#allocation3], %s232_s11, %s232_s11, %s233_s12  }
   0x5   :  { %227 = dma.done.wait [#allocation3], 8192  }
   0x6   :  { %228 = vsyncadd [#allocation3], 4294959104  ;;  %v25_v0 = vld [vmem:[#allocation2] sm:$0xff]  ;;  %v26_v4 = vld [vmem:[#allocation2 + $0x8] sm:$0xff]  ;;  %s234_s0 = smov [#allocation5]   ;;  %s162_s16 = sshll.u32 %s258_s1, 4  ;;  %s163_s16 = int_to_ptr.hbm [resolvable:$true] %s162_s16 }
   0x7   :  { %v42_v1 = vld [vmem:[#allocation2 + $0x80] sm:$0xff]  ;;  %v43_v5 = vld [vmem:[#allocation2 + $0x88] sm:$0xff]  ;;  %v27_v9 = vld [vmem:[#allocation2 + $0x10] sm:$0xff]  ;;  %s160_s13 = sshll.u32 %s234_s0, 4  ;;  %s161_s13 = int_to_ptr.vmem [resolvable:$true] %s160_s13 }
   0x8   :  { %v75_v2 = vld [vmem:[#allocation2 + $0x100] sm:$0xff]  ;;  %v58_v3 = vadd.f32 %v42_v1, %v25_v0  ;;  %v59_v7 = vadd.f32 %v43_v5, %v26_v4  ;;  %v76_v8 = vld [vmem:[#allocation2 + $0x108] sm:$0xff]  ;;  %v44_v12 = vld [vmem:[#allocation2 + $0x90] sm:$0xff] }
   0x9   :  { %v108_v6 = vld [vmem:[#allocation2 + $0x180] sm:$0xff]  ;;  %v109_v11 = vld [vmem:[#allocation2 + $0x188] sm:$0xff]  ;;  %v77_v13 = vld [vmem:[#allocation2 + $0x110] sm:$0xff]  ;;  %v60_v15 = vadd.f32 %v44_v12, %v27_v9 }
   0xa   :  { %v91_v10 = vadd.f32 %v75_v2, %v58_v3  ;;  %v92_v14 = vadd.f32 %v76_v8, %v59_v7  ;;  %v28_v16 = vld [vmem:[#allocation2 + $0x18] sm:$0xff]  ;;  %v110_v20 = vld [vmem:[#allocation2 + $0x190] sm:$0xff]  ;;  %v29_v22 = vld [vmem:[#allocation2 + $0x20] sm:$0xff] }
   0xb   :  { %v45_v17 = vld [vmem:[#allocation2 + $0x98] sm:$0xff]  ;;  %v46_v23 = vld [vmem:[#allocation2 + $0xa0] sm:$0xff]  ;;  %v93_v25 = vadd.f32 %v77_v13, %v60_v15  ;;  %v30_v29 = vld [vmem:[#allocation2 + $0x28] sm:$0xff] }
   0xc   :  { %v78_v18 = vld [vmem:[#allocation2 + $0x118] sm:$0xff]  ;;  %v124_v19 = vadd.f32 %v108_v6, %v91_v10  ;;  %v61_v21 = vadd.f32 %v45_v17, %v28_v16  ;;  %v125_v24 = vadd.f32 %v109_v11, %v92_v14  ;;  %v62_v27 = vadd.f32 %v46_v23, %v29_v22  ;;  %v79_v28 = vld [vmem:[#allocation2 + $0x120] sm:$0xff]  ;;  %v47_v32 = vld [vmem:[#allocation2 + $0xa8] sm:$0xff] }
   0xd   :  { %v111_v26 = vld [vmem:[#allocation2 + $0x198] sm:$0xff]  ;;  %v112_v31 = vld [vmem:[#allocation2 + $0x1a0] sm:$0xff]  ;;  %v80_v33 = vld [vmem:[#allocation2 + $0x128] sm:$0xff]  ;;  %v126_v34 = vadd.f32 %v110_v20, %v93_v25  ;;  %v63_v36 = vadd.f32 %v47_v32, %v30_v29 }
   0xe   :  { %140 = vst [vmem:[#allocation5] sm:$0xff] %v124_v19  ;;  %v94_v30 = vadd.f32 %v78_v18, %v61_v21  ;;  %v95_v35 = vadd.f32 %v79_v28, %v62_v27  ;;  %v31_v37 = vld [vmem:[#allocation2 + $0x30] sm:$0xff]  ;;  %v113_v41 = vld [vmem:[#allocation2 + $0x1a8] sm:$0xff]  ;;  %v32_v43 = vld [vmem:[#allocation2 + $0x38] sm:$0xff] }
   0xf   :  { %141 = vst [vmem:[#allocation5 + $0x8] sm:$0xff] %v125_v24  ;;  %v48_v38 = vld [vmem:[#allocation2 + $0xb0] sm:$0xff]  ;;  %v49_v44 = vld [vmem:[#allocation2 + $0xb8] sm:$0xff]  ;;  %v96_v46 = vadd.f32 %v80_v33, %v63_v36  ;;  %v33_v50 = vld [vmem:[#allocation2 + $0x40] sm:$0xff] }
  0x10   :  { %v81_v39 = vld [vmem:[#allocation2 + $0x130] sm:$0xff]  ;;  %v127_v40 = vadd.f32 %v111_v26, %v94_v30  ;;  %v64_v42 = vadd.f32 %v48_v38, %v31_v37  ;;  %142 = vst [vmem:[#allocation5 + $0x10] sm:$0xff] %v126_v34  ;;  %v128_v45 = vadd.f32 %v112_v31, %v95_v35  ;;  %v65_v48 = vadd.f32 %v49_v44, %v32_v43  ;;  %v82_v49 = vld [vmem:[#allocation2 + $0x138] sm:$0xff]  ;;  %v50_v53 = vld [vmem:[#allocation2 + $0xc0] sm:$0xff] }
  0x11   :  { %v114_v47 = vld [vmem:[#allocation2 + $0x1b0] sm:$0xff]  ;;  %v115_v52 = vld [vmem:[#allocation2 + $0x1b8] sm:$0xff]  ;;  %v83_v54 = vld [vmem:[#allocation2 + $0x140] sm:$0xff]  ;;  %v129_v55 = vadd.f32 %v113_v41, %v96_v46  ;;  %v66_v57 = vadd.f32 %v50_v53, %v33_v50 }
  0x12   :  { %143 = vst [vmem:[#allocation5 + $0x18] sm:$0xff] %v127_v40  ;;  %v97_v51 = vadd.f32 %v81_v39, %v64_v42  ;;  %v98_v56 = vadd.f32 %v82_v49, %v65_v48  ;;  %v34_v58 = vld [vmem:[#allocation2 + $0x48] sm:$0xff]  ;;  %v116_v62 = vld [vmem:[#allocation2 + $0x1c0] sm:$0xff]  ;;  %v35_v0 = vld [vmem:[#allocation2 + $0x50] sm:$0xff] }
  0x13   :  { %144 = vst [vmem:[#allocation5 + $0x20] sm:$0xff] %v128_v45  ;;  %v51_v59 = vld [vmem:[#allocation2 + $0xc8] sm:$0xff]  ;;  %v52_v1 = vld [vmem:[#allocation2 + $0xd0] sm:$0xff]  ;;  %v99_v3 = vadd.f32 %v83_v54, %v66_v57  ;;  %v36_v7 = vld [vmem:[#allocation2 + $0x58] sm:$0xff] }
  0x14   :  { %v84_v60 = vld [vmem:[#allocation2 + $0x148] sm:$0xff]  ;;  %v130_v61 = vadd.f32 %v114_v47, %v97_v51  ;;  %v67_v63 = vadd.f32 %v51_v59, %v34_v58  ;;  %145 = vst [vmem:[#allocation5 + $0x28] sm:$0xff] %v129_v55  ;;  %v131_v2 = vadd.f32 %v115_v52, %v98_v56  ;;  %v68_v5 = vadd.f32 %v52_v1, %v35_v0  ;;  %v85_v6 = vld [vmem:[#allocation2 + $0x150] sm:$0xff]  ;;  %v53_v10 = vld [vmem:[#allocation2 + $0xd8] sm:$0xff] }
  0x15   :  { %v117_v4 = vld [vmem:[#allocation2 + $0x1c8] sm:$0xff]  ;;  %v118_v9 = vld [vmem:[#allocation2 + $0x1d0] sm:$0xff]  ;;  %v86_v11 = vld [vmem:[#allocation2 + $0x158] sm:$0xff]  ;;  %v132_v12 = vadd.f32 %v116_v62, %v99_v3  ;;  %v69_v14 = vadd.f32 %v53_v10, %v36_v7 }
  0x16   :  { %146 = vst [vmem:[#allocation5 + $0x30] sm:$0xff] %v130_v61  ;;  %v100_v8 = vadd.f32 %v84_v60, %v67_v63  ;;  %v101_v13 = vadd.f32 %v85_v6, %v68_v5  ;;  %v37_v15 = vld [vmem:[#allocation2 + $0x60] sm:$0xff]  ;;  %v119_v19 = vld [vmem:[#allocation2 + $0x1d8] sm:$0xff]  ;;  %v38_v21 = vld [vmem:[#allocation2 + $0x68] sm:$0xff] }
  0x17   :  { %147 = vst [vmem:[#allocation5 + $0x38] sm:$0xff] %v131_v2  ;;  %v54_v16 = vld [vmem:[#allocation2 + $0xe0] sm:$0xff]  ;;  %v55_v22 = vld [vmem:[#allocation2 + $0xe8] sm:$0xff]  ;;  %v102_v24 = vadd.f32 %v86_v11, %v69_v14  ;;  %v39_v28 = vld [vmem:[#allocation2 + $0x70] sm:$0xff] }
  0x18   :  { %v87_v17 = vld [vmem:[#allocation2 + $0x160] sm:$0xff]  ;;  %v133_v18 = vadd.f32 %v117_v4, %v100_v8  ;;  %v70_v20 = vadd.f32 %v54_v16, %v37_v15  ;;  %148 = vst [vmem:[#allocation5 + $0x40] sm:$0xff] %v132_v12  ;;  %v134_v23 = vadd.f32 %v118_v9, %v101_v13  ;;  %v71_v26 = vadd.f32 %v55_v22, %v38_v21  ;;  %v88_v27 = vld [vmem:[#allocation2 + $0x168] sm:$0xff]  ;;  %v56_v31 = vld [vmem:[#allocation2 + $0xf0] sm:$0xff] }
  0x19   :  { %v120_v25 = vld [vmem:[#allocation2 + $0x1e0] sm:$0xff]  ;;  %v121_v30 = vld [vmem:[#allocation2 + $0x1e8] sm:$0xff]  ;;  %v89_v32 = vld [vmem:[#allocation2 + $0x170] sm:$0xff]  ;;  %v135_v33 = vadd.f32 %v119_v19, %v102_v24  ;;  %v72_v35 = vadd.f32 %v56_v31, %v39_v28 }
  0x1a   :  { %149 = vst [vmem:[#allocation5 + $0x48] sm:$0xff] %v133_v18  ;;  %v103_v29 = vadd.f32 %v87_v17, %v70_v20  ;;  %v104_v34 = vadd.f32 %v88_v27, %v71_v26  ;;  %v40_v36 = vld [vmem:[#allocation2 + $0x78] sm:$0xff]  ;;  %v122_v40 = vld [vmem:[#allocation2 + $0x1f0] sm:$0xff] }
  0x1b   :  { %150 = vst [vmem:[#allocation5 + $0x50] sm:$0xff] %v134_v23  ;;  %v57_v37 = vld [vmem:[#allocation2 + $0xf8] sm:$0xff]  ;;  %v105_v43 = vadd.f32 %v89_v32, %v72_v35 }
  0x1c   :  { %v90_v38 = vld [vmem:[#allocation2 + $0x178] sm:$0xff]  ;;  %v136_v39 = vadd.f32 %v120_v25, %v103_v29  ;;  %v73_v41 = vadd.f32 %v57_v37, %v40_v36  ;;  %151 = vst [vmem:[#allocation5 + $0x58] sm:$0xff] %v135_v33  ;;  %v137_v42 = vadd.f32 %v121_v30, %v104_v34 }
  0x1d   :  { %v123_v44 = vld [vmem:[#allocation2 + $0x1f8] sm:$0xff]  ;;  %v138_v46 = vadd.f32 %v122_v40, %v105_v43 }
  0x1e   :  { %152 = vst [vmem:[#allocation5 + $0x60] sm:$0xff] %v136_v39  ;;  %v106_v45 = vadd.f32 %v90_v38, %v73_v41 }
  0x1f   :  { %153 = vst [vmem:[#allocation5 + $0x68] sm:$0xff] %v137_v42 }
  0x20   :  { %v139_v47 = vadd.f32 %v123_v44, %v106_v45  ;;  %154 = vst [vmem:[#allocation5 + $0x70] sm:$0xff] %v138_v46 }
  0x22   :  { %155 = vst [vmem:[#allocation5 + $0x78] sm:$0xff] %v139_v47 }
  0x23   :  { %168 = dma.vmem_to_hbm [thread:$0]  %s161_s13, 2048, %s163_s16, [#allocation4], %s232_s11, %s232_s11, %s233_s12  }
  0x24   :  { %229 = dma.done.wait [#allocation4], 2048  }
  0x25   :  { %230 = vsyncadd [#allocation4], 4294965248 }
  0x26   :  { %173 = vsyncpa [#allocation3], 1 }
  0x27   :  { %174 = vsyncpa [#allocation4], 1 }

</bundles_post_ra>
